<compile_context>
chip_gen: v7x
topology: tpu7x:2x2x1
jax: 0.10.0
libtpu: 0.0.40
codegen_flags: <defaults>
</compile_context>

<pallas_src>
import functools

import jax
import jax.numpy as jnp
from jax.experimental import pallas as pl
from jax.experimental.pallas import tpu as pltpu


# ---------------------------------------------------------------------------
# Kernel
# ---------------------------------------------------------------------------
def fusion_kernel(x_ref, w_ref, b_ref, o_ref, *scratch, n_k):
    # x_ref  : (TM, TK)        modality m's input tile
    # w_ref  : (TK, 2*TN)      fused [Wt_tile | Wg_tile] weight slab
    # b_ref  : (1, 2*TN) f32   fused [bt_tile | bg_tile] bias
    # o_ref  : (TM, TN)  f32   output tile, resident across the (m, k) axes
    # scratch: () if n_k == 1 else ((TM, 2*TN) f32 pre-activation accumulator,)
    m = pl.program_id(2)
    tn = o_ref.shape[-1]

    def gated_accumulate(z):
        # tanh branch | gate branch split at a static lane offset, then gate.
        prod = jnp.tanh(z[:, :tn]) * jax.nn.sigmoid(z[:, tn:])

        @pl.when(m == 0)
        def _():
            o_ref[...] = prod.astype(o_ref.dtype)

        @pl.when(m > 0)
        def _():
            o_ref[...] += prod.astype(o_ref.dtype)

    # One wide MXU matmul covering both branches, f32 accumulation.
    partial_z = jnp.dot(x_ref[...], w_ref[...], preferred_element_type=jnp.float32)

    if n_k == 1:
        # Common case (input_dim <= TK): no K accumulator round-trip at all.
        gated_accumulate(partial_z + b_ref[...])
    else:
        (pre_acc,) = scratch
        k = pl.program_id(3)

        @pl.when(k == 0)
        def _():
            pre_acc[...] = partial_z          # first-iteration '=', no zero store

        @pl.when(k > 0)
        def _():
            pre_acc[...] += partial_z

        @pl.when(k == n_k - 1)
        def _():
            gated_accumulate(pre_acc[...] + b_ref[...])


# ---------------------------------------------------------------------------
# Tiling / parameter preparation helpers
# ---------------------------------------------------------------------------
def _pick_tile(dim, cap, align):
    """Return (tile, padded_dim).

    Either the full dim (exempt from the (8,128) BlockSpec rule), or an
    `align`-multiple divisor <= cap, or an `align`-multiple tile with the dim
    zero-padded up to a multiple of it. Never an unaligned partial tile.
    """
    if dim <= cap:
        return dim, dim
    hi = (min(cap, dim) // align) * align
    for t in range(hi, 0, -align):
        if dim % t == 0:
            return t, dim
    t = max(hi, align)
    padded = -(-dim // t) * t
    return t, padded


def _fuse_params(wt, bt, wg, bg, tn):
    """Interleave tanh/gate params so each hidden tile's [Wt|Wg] slab is contiguous."""
    n_mod, d, h = wt.shape
    n_h = h // tn
    w_cat = jnp.concatenate(
        [wt.reshape(n_mod, d, n_h, 1, tn), wg.reshape(n_mod, d, n_h, 1, tn)],
        axis=3,
    ).reshape(n_mod, d, n_h * 2 * tn)
    b_cat = jnp.concatenate(
        [bt.reshape(n_mod, 1, n_h, 1, tn), bg.reshape(n_mod, 1, n_h, 1, tn)],
        axis=3,
    ).reshape(n_mod, 1, n_h * 2 * tn)
    return w_cat, b_cat


# ---------------------------------------------------------------------------
# Jitted forward (pre-fused params come in; fusion is NOT in this path)
# ---------------------------------------------------------------------------
@functools.partial(
    jax.jit, static_argnames=("tm", "tn", "tk", "bs_pad", "k_pad", "hidden")
)
def _forward(x_stack, w_cat, b_cat, *, tm, tn, tk, bs_pad, k_pad, hidden):
    n_mod, bs, d = x_stack.shape
    hidden_pad = w_cat.shape[-1] // 2
    n_bm, n_hn, n_k = bs_pad // tm, hidden_pad // tn, k_pad // tk

    x = x_stack.astype(w_cat.dtype)
    if (bs_pad, k_pad) != (bs, d):
        x = jnp.pad(x, ((0, 0), (0, bs_pad - bs), (0, k_pad - d)))

    itemsize = jnp.dtype(w_cat.dtype).itemsize
    x_bytes = n_mod * bs_pad * k_pad * itemsize
    w_bytes = n_mod * k_pad * 2 * hidden_pad * itemsize
    b_bytes = n_mod * 2 * hidden_pad * 4
    out_bytes = bs_pad * hidden_pad * 4
    cost = pl.CostEstimate(
        flops=2 * n_mod * bs_pad * k_pad * 2 * hidden_pad,
        transcendentals=2 * n_mod * bs_pad * hidden_pad,
        # x is re-streamed per hidden tile, weights/biases per batch tile.
        bytes_accessed=n_hn * x_bytes + n_bm * (w_bytes + b_bytes) + out_bytes,
    )

    vmem_bytes = (
        2 * (tm * tk + tk * 2 * tn) * itemsize      # double-buffered x + W tiles
        + 2 * 2 * tn * 4                            # double-buffered bias tiles
        + 2 * tm * tn * 4                           # double-buffered f32 output tile
        + (0 if n_k == 1 else tm * 2 * tn * 4)      # K accumulator scratch
    )
    vmem_limit = min(max(int(vmem_bytes * 1.5) + (4 << 20), 16 << 20), 64 << 20)

    scratch = [] if n_k == 1 else [pltpu.VMEM((tm, 2 * tn), jnp.float32)]

    out_padded = pl.pallas_call(
        functools.partial(fusion_kernel, n_k=n_k),
        out_shape=jax.ShapeDtypeStruct((bs_pad, hidden_pad), jnp.float32),
        grid_spec=pltpu.PrefetchScalarGridSpec(
            num_scalar_prefetch=0,
            grid=(n_bm, n_hn, n_mod, n_k),
            in_specs=[
                # x: (n_mod, bs_pad, k_pad) -> (TM, TK)
                pl.BlockSpec((None, tm, tk), lambda bi, hi, m, ki: (m, bi, ki)),
                # w_cat: (n_mod, k_pad, n_h*2*TN) -> (TK, 2*TN)
                # v5e-only option if weight DMA is exposed: pipeline_mode=pl.Buffered(3)
                pl.BlockSpec((None, tk, 2 * tn), lambda bi, hi, m, ki: (m, ki, hi)),
                # b_cat: (n_mod, 1, n_h*2*TN) -> (1, 2*TN)
                pl.BlockSpec((None, 1, 2 * tn), lambda bi, hi, m, ki: (m, 0, hi)),
            ],
            # Output block ignores (m, k) -> resident accumulator across both
            # reduction axes; written with '=' at m==0, '+=' afterwards.
            out_specs=pl.BlockSpec((tm, tn), lambda bi, hi, m, ki: (bi, hi)),
            scratch_shapes=scratch,
        ),
        compiler_params=pltpu.CompilerParams(
            dimension_semantics=("parallel", "parallel", "arbitrary", "arbitrary"),
            vmem_limit_bytes=vmem_limit,
        ),
        cost_estimate=cost,
    )(x, w_cat, b_cat)

    return out_padded[:bs, :hidden]


# ---------------------------------------------------------------------------
# Module wrapper (fusion + padding hoisted to construction time)
# ---------------------------------------------------------------------------
class MultimodalGatedFusionTPU:
    """Pallas TPU port of MultimodalGatedFusion
    (gate_input_type='same', gate_output_type='sigmoid-vector')."""

    # Tile caps: double-buffered footprint at the caps (bf16) is ~12-17 MiB,
    # fitting v7x's 64 MiB VMEM as well as v5e/v6e's 128 MiB.
    TM_CAP, TN_CAP, TK_CAP = 512, 512, 1024

    def __init__(self, wt, bt, wg, bg, compute_dtype=jnp.bfloat16):
        """
        wt, wg : (n_mod, input_dim, hidden)  Linear weights pre-transposed to (in, out)
        bt, bg : (n_mod, 1, hidden)
        compute_dtype: dtype for x / fused weights on the MXU (bf16 default —
            MXU-native, halves DMA bytes). Accumulation, biases and the output
            are always f32; pass jnp.float32 for exact PyTorch-f32 parity.
        """
        n_mod, input_dim, hidden = wt.shape
        self.n_mod, self.input_dim, self.hidden = n_mod, input_dim, hidden
        self.compute_dtype = jnp.float32 if compute_dtype is None else compute_dtype

        self.tn, self.hidden_pad = _pick_tile(hidden, self.TN_CAP, 128)
        self.tk, self.k_pad = _pick_tile(input_dim, self.TK_CAP, 128)
        self.n_hn = self.hidden_pad // self.tn

        dk, dh = self.k_pad - input_dim, self.hidden_pad - hidden
        if dk or dh:
            wt = jnp.pad(wt, ((0, 0), (0, dk), (0, dh)))
            wg = jnp.pad(wg, ((0, 0), (0, dk), (0, dh)))
            bt = jnp.pad(bt, ((0, 0), (0, 0), (0, dh)))
            bg = jnp.pad(bg, ((0, 0), (0, 0), (0, dh)))

        # One-time fusion (was previously inside the jitted forward).
        w_cat, b_cat = _fuse_params(wt, bt, wg, bg, self.tn)
        self.w_cat = jax.device_put(w_cat.astype(self.compute_dtype))
        self.b_cat = jax.device_put(b_cat.astype(jnp.float32))

    def __call__(self, *xs):
        """xs: one (bs, input_dim) array per modality (matches the PyTorch forward)."""
        assert len(xs) == self.n_mod
        x_stack = jnp.stack(xs)
        bs = x_stack.shape[1]

        align_m = 16 if jnp.dtype(self.compute_dtype).itemsize == 2 else 8
        tm, bs_pad = _pick_tile(bs, self.TM_CAP, align_m)
        # v7x has 2 TensorCores: make sure the ("parallel","parallel") sub-grid
        # has >= 2 blocks when the shapes allow it (harmless on v5e/v6e).
        if (bs_pad // tm) * self.n_hn < 2 and tm % (2 * align_m) == 0:
            tm //= 2

        return _forward(
            x_stack, self.w_cat, self.b_cat,
            tm=tm, tn=self.tn, tk=self.tk,
            bs_pad=bs_pad, k_pad=self.k_pad, hidden=self.hidden,
        )


# ---------------------------------------------------------------------------
# Reference + demo
# ---------------------------------------------------------------------------
def reference(x_stack, wt, bt, wg, bg):
    t = jnp.tanh(jnp.einsum("mbd,mdh->mbh", x_stack, wt) + bt)
    g = jax.nn.sigmoid(jnp.einsum("mbd,mdh->mbh", x_stack, wg) + bg)
    return (t * g).sum(axis=0)


if __name__ == "__main__":
    # Small shapes consistent with the module's forward.
    n_modalities = 3
    batch = 8
    input_dim = 32
    hidden_dim = 32  # module default: hidden_dim = input_dim

    key = jax.random.PRNGKey(0)
    kx, kwt, kbt, kwg, kbg = jax.random.split(key, 5)

    # Per-modality inputs, stacked for convenience: (n_mod, bs, input_dim)
    x_stack = jax.random.normal(kx, (n_modalities, batch, input_dim), jnp.float32)
    xs = [x_stack[i] for i in range(n_modalities)]

    # Deterministic parameter init (Linear weights stored pre-transposed (in, out)).
    scale = 1.0 / jnp.sqrt(jnp.float32(input_dim))
    wt = jax.random.uniform(
        kwt, (n_modalities, input_dim, hidden_dim), jnp.float32, -scale, scale
    )
    bt = jax.random.uniform(
        kbt, (n_modalities, 1, hidden_dim), jnp.float32, -scale, scale
    )
    wg = jax.random.uniform(
        kwg, (n_modalities, input_dim, hidden_dim), jnp.float32, -scale, scale
    )
    bg = jax.random.uniform(
        kbg, (n_modalities, 1, hidden_dim), jnp.float32, -scale, scale
    )

    ref = reference(x_stack, wt, bt, wg, bg)

    # f32 compute path (matches the PyTorch module's precision).
    mod_f32 = MultimodalGatedFusionTPU(wt, bt, wg, bg, compute_dtype=jnp.float32)
    out = jax.block_until_ready(mod_f32(*xs))
    assert out.shape == (batch, hidden_dim)
    assert jnp.allclose(out, ref, atol=1e-4, rtol=1e-4), "f32 kernel mismatch vs reference"

    # Default bf16 MXU path (f32 accumulation) — relaxed tolerance for the downcast.
    mod_bf16 = MultimodalGatedFusionTPU(wt, bt, wg, bg)  # bf16 is the default
    out_bf16 = jax.block_until_ready(mod_bf16(*xs))
    assert out_bf16.shape == (batch, hidden_dim)
    assert jnp.allclose(out_bf16, ref, atol=5e-2, rtol=5e-2), "bf16 kernel mismatch vs reference"

    print("KERNEL_OK")
</pallas_src>

<mosaic_0001>
module attributes {stable_mosaic.version = 11 : i64} {
  func.func @fusion_kernel(%arg0: i32, %arg1: i32, %arg2: i32, %arg3: i32, %arg4: memref<1x8x32xf32, #tpu.memory_space<vmem>>, %arg5: memref<1x32x64xf32, #tpu.memory_space<vmem>>, %arg6: memref<1x1x64xf32, #tpu.memory_space<vmem>>, %arg7: memref<8x32xf32, #tpu.memory_space<vmem>>) attributes {dimension_semantics = [#tpu.dimension_semantics<parallel>, #tpu.dimension_semantics<parallel>, #tpu.dimension_semantics<arbitrary>, #tpu.dimension_semantics<arbitrary>], iteration_bounds = array<i64: 1, 1, 3, 1>, scalar_prefetch = 0 : i64, scratch_operands = 0 : i64, tpu.core_type = #tpu.core_type<tc>, window_params = [{transform_indices = @transform_0, window_bounds = array<i64: 1, 8, 32>}, {transform_indices = @transform_1, window_bounds = array<i64: 1, 32, 64>}, {transform_indices = @transform_2, window_bounds = array<i64: 1, 1, 64>}, {transform_indices = @transform_3, window_bounds = array<i64: 8, 32>}]} {
    %c0 = arith.constant 0 : index
    %c0_0 = arith.constant 0 : index
    %c0_1 = arith.constant 0 : index
    %0 = vector.load %arg4[%c0, %c0_0, %c0_1] : memref<1x8x32xf32, #tpu.memory_space<vmem>>, vector<1x8x32xf32>
    %1 = vector.shape_cast %0 : vector<1x8x32xf32> to vector<8x32xf32>
    %c0_2 = arith.constant 0 : index
    %c0_3 = arith.constant 0 : index
    %c0_4 = arith.constant 0 : index
    %2 = vector.load %arg5[%c0_2, %c0_3, %c0_4] : memref<1x32x64xf32, #tpu.memory_space<vmem>>, vector<1x32x64xf32>
    %3 = vector.shape_cast %2 : vector<1x32x64xf32> to vector<32x64xf32>
    %cst = arith.constant dense<0.000000e+00> : vector<8x64xf32>
    %4 = tpu.matmul %1, %3, %cst {dimension_numbers = #tpu.dot_dimension_numbers<[1], [0], [0], [1], [0, 0, 1, 1], [], []>} : vector<8x32xf32>, vector<32x64xf32>, vector<8x64xf32> -> vector<8x64xf32>
    %c0_5 = arith.constant 0 : index
    %c0_6 = arith.constant 0 : index
    %c0_7 = arith.constant 0 : index
    %5 = vector.load %arg6[%c0_5, %c0_6, %c0_7] : memref<1x1x64xf32, #tpu.memory_space<vmem>>, vector<1x1x64xf32>
    %6 = vector.shape_cast %5 : vector<1x1x64xf32> to vector<1x64xf32>
    %7 = vector.broadcast %6 : vector<1x64xf32> to vector<8x64xf32>
    %8 = arith.addf %4, %7 : vector<8x64xf32>
    %9 = vector.extract_strided_slice %8 {offsets = [0, 0], sizes = [8, 32], strides = [1, 1]} : vector<8x64xf32> to vector<8x32xf32>
    %10 = math.tanh %9 : vector<8x32xf32>
    %11 = vector.extract_strided_slice %8 {offsets = [0, 32], sizes = [8, 32], strides = [1, 1]} : vector<8x64xf32> to vector<8x32xf32>
    %12 = arith.negf %11 : vector<8x32xf32>
    %13 = math.exp %12 : vector<8x32xf32>
    %cst_8 = arith.constant 1.000000e+00 : f32
    %14 = vector.broadcast %cst_8 : f32 to vector<8x32xf32>
    %15 = arith.addf %14, %13 : vector<8x32xf32>
    %16 = arith.divf %14, %15 : vector<8x32xf32>
    %17 = arith.mulf %10, %16 : vector<8x32xf32>
    %c0_i32 = arith.constant 0 : i32
    %18 = arith.cmpi eq, %arg2, %c0_i32 : i32
    %19 = arith.extui %18 : i1 to i32
    %c0_i32_9 = arith.constant 0 : i32
    %20 = arith.cmpi ne, %19, %c0_i32_9 : i32
    scf.if %20 {
      %c0_12 = arith.constant 0 : index
      %c0_13 = arith.constant 0 : index
      %24 = vector.load %arg7[%c0_12, %c0_13] : memref<8x32xf32, #tpu.memory_space<vmem>>, vector<8x32xf32>
      tpu.vector_store %arg7[%c0_12, %c0_13], %17 {strides = array<i32>} : memref<8x32xf32, #tpu.memory_space<vmem>>, vector<8x32xf32>,
    } else {
    }
    %c0_i32_10 = arith.constant 0 : i32
    %21 = arith.cmpi sgt, %arg2, %c0_i32_10 : i32
    %22 = arith.extui %21 : i1 to i32
    %c0_i32_11 = arith.constant 0 : i32
    %23 = arith.cmpi ne, %22, %c0_i32_11 : i32
    scf.if %23 {
      %c0_12 = arith.constant 0 : index
      %c0_13 = arith.constant 0 : index
      %24 = vector.load %arg7[%c0_12, %c0_13] : memref<8x32xf32, #tpu.memory_space<vmem>>, vector<8x32xf32>
      %25 = arith.addf %24, %17 : vector<8x32xf32>
      %c0_14 = arith.constant 0 : index
      %c0_15 = arith.constant 0 : index
      %26 = vector.load %arg7[%c0_14, %c0_15] : memref<8x32xf32, #tpu.memory_space<vmem>>, vector<8x32xf32>
      tpu.vector_store %arg7[%c0_14, %c0_15], %25 {strides = array<i32>} : memref<8x32xf32, #tpu.memory_space<vmem>>, vector<8x32xf32>,
    } else {
    }
    return
  }
  func.func @transform_0(%arg0: i32, %arg1: i32, %arg2: i32, %arg3: i32) -> (i32, i32, i32) {
    %c0_i32 = arith.constant 0 : i32
    return %arg2, %arg0, %arg3 : i32, i32, i32
  }
  func.func @transform_1(%arg0: i32, %arg1: i32, %arg2: i32, %arg3: i32) -> (i32, i32, i32) {
    %c0_i32 = arith.constant 0 : i32
    return %arg2, %arg3, %arg1 : i32, i32, i32
  }
  func.func @transform_2(%arg0: i32, %arg1: i32, %arg2: i32, %arg3: i32) -> (i32, i32, i32) {
    %c0_i32 = arith.constant 0 : i32
    %c0_i32_0 = arith.constant 0 : i32
    return %arg2, %c0_i32, %arg1 : i32, i32, i32
  }
  func.func @transform_3(%arg0: i32, %arg1: i32, %arg2: i32, %arg3: i32) -> (i32, i32) {
    %c0_i32 = arith.constant 0 : i32
    return %arg0, %arg1 : i32, i32
  }
}

</mosaic_0001>

<bundles_post_ra>
// kernel: _forward.1
= control target key start
LH: loop header
LB: loop body
LE: loop exit
PB: predicated region body
PF: predicated region fallthrough
CT: control target
= control target key end

     0   :  { %8 = vsyncpa [#allocation3], 0  ;;  %s1018_s0 = inlined_call_operand.hbm [shape: f32[3,8,32], index: 0, kind: input, shape index: {}]   ;;  %s1019_s1 = inlined_call_operand.hbm [shape: f32[3,32,64], index: 1, kind: input, shape index: {}]   ;;  %s1020_s2 = inlined_call_operand.vmem [shape: f32[3,1,64], index: 2, kind: input, shape index: {}]   ;;  %s1021_s3 = inlined_call_operand.hbm [shape: f32[8,32], index: 3, kind: output, shape index: {}]  }
   0x1   :  { %10 = vsyncpa [#allocation3 + $0x1], 0 }
   0x2   :  { %11 = vsyncpa [#allocation6], 0 }
   0x3   :  { %13 = vsyncpa [#allocation6 + $0x1], 0 }
   0x4   :  { %14 = vsyncpa [#allocation4], 0  ;;  %s809_s12 = smov 0   ;;  %s811_s13 = smov 0  }
   0x5   :  { %s813_s14 = smov 0   ;;  %s815_s15 = smov 0  }
   0x6   :  { %s817_s16 = smov 0   ;;  %s819_s17 = smov 0  }
   0x7 LB: > { %s512_s18 = sadd.s32 4294967295, %s778_s17   ;;  %s38_s19 = sadd.s32 1, %s774_s16  ;;  %s778_s17 = sphi %s819_s17, %s20_s17   ;;  %s774_s16 = sphi %s817_s16, %s1035_s16   ;;  %s770_s15 = sphi %s815_s15, %s1034_s15   ;;  %s766_s14 = sphi %s813_s14, %s1033_s14   ;;  %s762_s13 = sphi %s811_s13, %s1032_s13   ;;  %s758_s12 = sphi %s809_s12, %s1031_s12  }
   0x8   : > { %p40_p0 = scmp.ge.s32.totalorder %s38_s19, 3  ;;  %s57_s20 = sadd.s32 1, %s766_s14 }
   0x9   : > { %p64_p1 = scmp.ne.s32.totalorder %s766_s14, %s762_s13  ;;  %p65_p2 = scmp.eq.s32.totalorder %s778_s17, 0 }
   0xa   : > { %s1037_s19 = smov (%p40_p0, %s38_s19), 0  ;;  %p70_p4 = scmp.ne.s32.totalorder %s762_s13, %s758_s12 }
   0xb   : > { %p845_p3 = por %p65_p2, %p64_p1  ;;  %s50_s22 = ssub.s32 %s774_s16, %s1037_s19 }
   0xc   : > { %p71_p5 = scmp.eq.s32.totalorder %s512_s18, 0  ;;  %p55_p6 = scmp.eq.s32.totalorder %s50_s22, 0 }
   0xd   : > { %p570_p8 = scmp.lt.s32.totalorder %s778_s17, 3  ;;  %s863_s25 = sand.u32 1, %s766_s14  }
   0xe   : > { %p854_p7 = por %p71_p5, %p70_p4  ;;  %s516_s26 = sshll.u32 %s774_s16, 7 }
   0xf   : > { %s860_s24 = scalar_select %p55_p6, %s766_s14, %s57_s20  }
  0x10   : > { %s1024_s23 = scalar_select %p854_p7, 1, 0 }
  0x11   : > { %s515_s27 = sshll.u32 %s863_s25, 3  ;;  %s870_s30 = scalar_lea.hbm %s1018_s0, %s516_s26 }
  0x12   : > { %s184_s4 = scalar_lea.vmem [#allocation2], %s515_s27  ;;  %p874_p9 = pnand %p570_p8, %p845_p3 }
  0x13   : > { %s193_s5 = sshll.u32 %s184_s4, 4  ;;  %s181_s7 = scalar_lea.sflag [#allocation3], %s863_s25  ;;  %s878_s5 = int_to_ptr.vmem [resolvable:$true] %s193_s5 }
  0x14   : > { %s634_s8 = scalar_lea.hbm %s870_s30, 128  ;;  %p636_p13 = pneg %p874_p9 }
  0x15   : > { %p635_p12 = scmp.ne.s32.totalorder %s870_s30, %s634_s8  ;;  %s639_s11 = scalar_lea.hbm %s1018_s0, 384 }
  0x16   : > { %p640_p2 = scmp.lt.u32.totalorder %s870_s30, %s1018_s0  ;;  %p641_p3 = scmp.lt.u32.totalorder %s639_s11, %s634_s8 }
  0x17   : > { %p637_p0 = pnand %p636_p13, %p635_p12  ;;  %p643_p5 = scmp.lt.u32.totalorder %s634_s8, %s870_s30 }
  0x18   : > { %p642_p4 = por %p641_p3, %p640_p2 }
  0x19   : > { %p638_p1 = pneg %p637_p0 }
  0x1a   : > { %p644_p6 = por %p643_p5, %p642_p4 }
  0x1c   : > { %p645_p8 = pnand %p644_p6, %p638_p1 }
  0x1e   : > { %648 = shalt.err (!%p645_p8)
}
  0x1f   : > { %s649_s21 = scalar_lea.vmem %s878_s5, 128  ;;  %s780_s22 = smov [#allocation2]  }
  0x20   : > { %p650_p12 = scmp.ne.s32.totalorder %s878_s5, %s649_s21  ;;  %s654_s26 = sshll.u32 %s780_s22, 4  ;;  %s655_s26 = int_to_ptr.vmem [resolvable:$false] %s654_s26 }
  0x21   : > { %s656_s27 = scalar_lea.vmem %s655_s26, 256  ;;  %p657_p11 = scmp.lt.s32.totalorder %s878_s5, %s655_s26 }
  0x22   : > { %p652_p0 = pnand %p650_p12, %p636_p13  ;;  %p658_p2 = scmp.lt.s32.totalorder %s656_s27, %s649_s21 }
  0x24   : > { %p653_p10 = pneg %p652_p0  ;;  %p659_p3 = por %p658_p2, %p657_p11 }
  0x26   : > { %p660_p4 = pnand %p659_p3, %p653_p10 }
  0x28   : > { %663 = shalt.err (!%p660_p4)
}
  0x29   : > { %566 = dma.hbm_to_vmem [thread:$0]  (!%p874_p9), %s870_s30, 128, %s878_s5, %s181_s7  }
  0x2a   : > { %p1026_p1 = scmp.lt.s32.totalorder %s778_s17, 4  ;;  %p1027_p5 = scmp.ge.s32.totalorder %s778_s17, 1 }
  0x2b   : > { %s517_s29 = sshll.u32 %s863_s25, 5  ;;  %s532_s4 = sshll.u32 %s774_s16, 9 }
  0x2c   : > { %p912_p6 = pnand %p1027_p5, %p1026_p1  ;;  %s921_s10 = scalar_lea.hbm %s1019_s1, %s532_s4 }
  0x2d   : > { %s204_s11 = scalar_lea.vmem [#allocation5], %s517_s29  ;;  %s201_s30 = scalar_lea.sflag [#allocation6], %s863_s25 }
  0x2e   : > { %s214_s12 = sshll.u32 %s204_s11, 4  ;;  %s664_s5 = scalar_lea.hbm %s921_s10, 512  ;;  %s923_s12 = int_to_ptr.vmem [resolvable:$true] %s214_s12 }
  0x2f   : > { %p665_p10 = scmp.ne.s32.totalorder %s921_s10, %s664_s5  ;;  %s669_s21 = scalar_lea.hbm %s1019_s1, 1536 }
  0x30   : > { %p670_p12 = scmp.lt.u32.totalorder %s921_s10, %s1019_s1  ;;  %p671_p0 = scmp.lt.u32.totalorder %s669_s21, %s664_s5 }
  0x31   : > { %p667_p11 = pnand %p665_p10, %p636_p13  ;;  %p673_p3 = scmp.lt.u32.totalorder %s664_s5, %s921_s10 }
  0x32   : > { %p672_p2 = por %p671_p0, %p670_p12 }
  0x33   : > { %p668_p8 = pneg %p667_p11 }
  0x34   : > { %p674_p4 = por %p673_p3, %p672_p2 }
  0x36   : > { %p675_p1 = pnand %p674_p4, %p668_p8 }
  0x38   : > { %678 = shalt.err (!%p675_p1)
}
  0x39   : > { %s679_s27 = scalar_lea.vmem %s923_s12, 512  ;;  %s781_s29 = smov [#allocation5]  }
  0x3a   : > { %p680_p5 = scmp.ne.s32.totalorder %s923_s12, %s679_s27  ;;  %s684_s4 = sshll.u32 %s781_s29, 4  ;;  %s685_s4 = int_to_ptr.vmem [resolvable:$false] %s684_s4 }
  0x3b   : > { %s686_s8 = scalar_lea.vmem %s685_s4, 1024  ;;  %p687_p7 = scmp.lt.s32.totalorder %s923_s12, %s685_s4 }
  0x3c   : > { %p682_p10 = pnand %p680_p5, %p636_p13  ;;  %p688_p12 = scmp.lt.s32.totalorder %s686_s8, %s679_s27 }
  0x3e   : > { %p683_p11 = pneg %p682_p10  ;;  %p689_p0 = por %p688_p12, %p687_p7 }
  0x40   : > { %p690_p2 = pnand %p689_p0, %p683_p11 }
  0x42   : > { %693 = shalt.err (!%p690_p2)
}
  0x43   : > { %s782_s9 = smov 128   ;;  %s783_s11 = smov 8  }
  0x44   : > { %569 = dma.hbm_to_vmem [thread:$0]  (!%p874_p9), %s921_s10, 512, %s923_s12, %s201_s30, %s782_s9, %s782_s9, %s783_s11  }
  0x45   : > { %235 = sbr.rel (%p912_p6) target bundleno = 483 (0x1e3), region = 32  ;;  %s237_s5 = sand.u32 (!%p912_p6), 1, %s762_s13  }
  0x46   : > { %s521_s7 = sshll.u32 (!%p912_p6), %s237_s5, 3  ;;  %s238_s20 = scalar_lea.sflag (!%p912_p6), [#allocation3], %s237_s5 }
  0x47   : > { %s241_s21 = scalar_lea.vmem (!%p912_p6), [#allocation2], %s521_s7  ;;  %p1029_p7 = scmp.ne.s32.totalorder (!%p912_p6), %s1024_s23, 0 }
  0x4c   : > { %745 = dma.done.wait (%p1029_p7), %s238_s20, 128  }
  0x4d   : > { %747 = vsyncadd (%p1029_p7), %s238_s20, 4294967168  ;;  %s522_s22 = sshll.u32 %s237_s5, 5  ;;  %s247_s26 = scalar_lea.sflag [#allocation6], %s237_s5 }
  0x4e   : > { %s250_s6 = scalar_lea.vmem [#allocation5], %s522_s22 }
  0x4f   : > { %749 = dma.done.wait (%p1029_p7), %s247_s26, 512  }
  0x50   : > { %751 = vsyncadd (%p1029_p7), %s247_s26, 4294966784  ;;  %v784_v0 = vmov 0.0|0.0   ;;  %vm785_vm0 = vmmov 0   ;;  %v786_v1 = vmov 0.0   ;;  %v287_v2 = vld [vmem:[%s250_s6] sm:$0xff]  ;;  %v288_v3 = vld [vmem:[%s250_s6 + $0x8] sm:$0xff] }
  0x51   : > { %549 = vmatprep.subr.bf16.mxu0 %v784_v0  ;;  %546 = vmatprep.mubr.msk.f32.mxu0 %vm785_vm0, %v786_v1  ;;  %v289_v4 = vld [vmem:[%s250_s6 + $0x10] sm:$0xff]  ;;  %v550_v5 = vpack.c.bf16 %v288_v3, %v287_v2  ;;  %v290_v6 = vld [vmem:[%s250_s6 + $0x18] sm:$0xff]  ;;  %vm298_vm1 = vcmask 261120   ;;  %p280_p9 = scmp.lt.s32.totalorder %s770_s15, 2  ;;  %s787_s12 = smov 96  }
  0x52   : > { %v553_v7 = vpack.c.bf16 %v290_v6, %v289_v4  ;;  %v286_v8 = vld [vmem:[%s241_s21] sm:$0xff]  ;;  %p526_p13 = scmp.ne.s32.totalorder %s770_s15, 0 }
  0x53   : > { %551 = vmatpush3.bf16.msra.mxu0 %v550_v5  ;;  %s281_s23 = scalar_select %p280_p9, %s770_s15, 2 }
  0x54   : > { %552 = vmatprep.subr.bf16.mxu0 %v784_v0 }
  0x55   : > { %s285_s10 = scalar_lea.vmem %s1020_s2, %s281_s23 }
  0x56   : > { %v523_v9 = vld [vmem:[%s285_s10] ss:$0 sm:$0xff] }
  0x57   : > { %554 = vmatpush3.bf16.msra.mxu0 %v553_v7 }
  0x5a   : > { %547 = vmatmul.mubr.msk.f32.vlgmr.msra.gmra.mrb[0].mxu0 %vm298_vm1, %v286_v8 }
 0x12d   : > { %v368_v10 = vpop.f32.mrb[0].mxu0 }
 0x12e   : > { %v369_v11 = vadd.f32 %v523_v9, %v368_v10  ;;  %v548_v12 = vpop.f32.mrb[1].mxu0 }
 0x130   : > { %v525_v13 = vmul.f32 -1.442695, %v369_v11 }
 0x132   : > { %628 = vpow2.f32 %v525_v13 }
 0x13c   : > { %v629_v14 = vpop.eup %628 }
 0x13d   : > { %v376_v15 = vadd.f32 1.0, %v629_v14 }
 0x13f   : > { %630 = vrcp.f32 %v376_v15 }
 0x140   : > { %632 = vtanh.f32 %v369_v11 }
 0x149   : > { %v631_v16 = vpop.eup %630 }
 0x14a   : > { %380 = vrot.lane.b32.xlu0 %v631_v16, %s787_s12  ;;  %v633_v17 = vpop.eup %632 }
 0x1b7   : > { %387 = sbr.rel (%p526_p13) target bundleno = 448 (0x1c0), region = 44 }
 0x1bc   : > { %v381_v18 = vpop.permute.xlu0 %380 }
 0x1bd   : > { %v383_v19 = vmul.f32 %v633_v17, %v381_v18 }
 0x1bf   : > { %388 = vst.msk [vmem:[#allocation7] sm:$0xff] %vm298_vm1, %v383_v19 }
 0x1c0 PF: > { %p527_p6 = scmp.le.s32.totalorder %s770_s15, 0 }
 0x1c2   : > { %392 = sbr.rel (%p527_p6) target bundleno = 458 (0x1ca), region = 48 }
 0x1c6   : > { %v393_v20 = vld [vmem:[#allocation7] sm:$0xff] (!%p527_p6) }
 0x1c7   : > { %v394_v21 = vadd.f32 (!%p527_p6), %v393_v20, %v383_v19 }
 0x1c9   : > { %395 = vst.msk [vmem:[#allocation7] sm:$0xff] %vm298_vm1, %v394_v21 }
 0x1ca PF: > { %p974_p8 = scmp.eq.s32.totalorder %s512_s18, 2  ;;  %s788_s27 = smov [#allocation7]  }
 0x1cb   : > { %s406_s29 = sshll.u32 %s788_s27, 4  ;;  %s407_s29 = int_to_ptr.vmem [resolvable:$true] %s406_s29 }
 0x1cc   : > { %s694_s4 = scalar_lea.vmem %s407_s29, 128  ;;  %p701_p5 = scmp.lt.s32.totalorder %s407_s29, %s407_s29 }
 0x1cd   : > { %p695_p3 = scmp.ne.s32.totalorder %s407_s29, %s694_s4  ;;  %p702_p10 = scmp.lt.s32.totalorder %s694_s4, %s694_s4 }
 0x1cf   : > { %p696_p4 = pnand %p695_p3, %p974_p8  ;;  %p703_p11 = por %p702_p10, %p701_p5 }
 0x1d1   : > { %p697_p1 = pneg %p696_p4 }
 0x1d3   : > { %p704_p12 = pnand %p703_p11, %p697_p1 }
 0x1d5   : > { %707 = shalt.err (!%p704_p12)
}
 0x1d6   : > { %s708_s18 = scalar_lea.hbm %s1021_s3, 128 }
 0x1d7   : > { %p709_p0 = scmp.ne.s32.totalorder %s1021_s3, %s708_s18  ;;  %p714_p9 = scmp.lt.u32.totalorder %s708_s18, %s1021_s3 }
 0x1d9   : > { %p710_p2 = pnand %p709_p0, %p974_p8 }
 0x1db   : > { %p711_p7 = pneg %p710_p2 }
 0x1dd   : > { %p716_p13 = pnand %p714_p9, %p711_p7 }
 0x1df   : > { %719 = shalt.err (!%p716_p13)
}
 0x1e0   : > { %560 = dma.vmem_to_hbm [thread:$0]  (%p974_p8), %s407_s29, 128, %s1021_s3, [#allocation4]  }
 0x1e1   : > { %753 = dma.done.wait (%p974_p8), [#allocation4], 128  }
 0x1e2   : > { %755 = vsyncadd (%p974_p8), [#allocation4], 4294967168 }
 0x1e3 PF: > { %s20_s17 = sadd.s32 1, %s778_s17   ;;  %s1031_s12 = smov %s762_s13 }
 0x1e4   : > { %p17_p6 = scmp.ge.s32.totalorder %s20_s17, 5   ;;  %s1032_s13 = smov %s766_s14 }
 0x1e5   : > { %s1033_s14 = smov %s860_s24  ;;  %s1034_s15 = smov %s774_s16 }
 0x1e6   : > { %s1035_s16 = smov %s1037_s19  ;;  %19 = sbr.rel (!%p17_p6) target bundleno = 7 (0x7), region = 94 }
 0x1ed   :  { %419 = vsyncpa [#allocation3], 1 }
 0x1ee   :  { %421 = vsyncpa [#allocation3 + $0x1], 1 }
 0x1ef   :  { %422 = vsyncpa [#allocation6], 1 }
 0x1f0   :  { %424 = vsyncpa [#allocation6 + $0x1], 1 }
 0x1f1   :  { %425 = vsyncpa [#allocation4], 1 }
 0x1f2   :  { %427 = vsyncpa [#allocation4 + $0x1], 1 }

</bundles_post_ra>
